<compile_context>
chip_gen: v6e
topology: v6e:2x2x1
jax: 0.10.0
libtpu: 0.0.40
codegen_flags: <defaults>
</compile_context>

<pallas_src>
import math

import jax
import jax.numpy as jnp
from jax.experimental import pallas as pl
from jax.experimental.pallas import tpu as pltpu


# ---------------------------------------------------------------------------
# Parameter construction (mirrors GaussianSmoothing.__init__ verbatim,
# including the module's exp(-((x - mean) / (2*std))**2) form).
# ---------------------------------------------------------------------------
def make_gaussian_taps(kernel_size, sigma, dim=2):
    """Per-axis normalized 1D taps whose outer product equals the module's
    normalized N-D kernel (the module's kernel is an exact outer product, so
    normalizing each factor reproduces it)."""
    if isinstance(kernel_size, (int, float)):
        kernel_size = [int(kernel_size)] * dim
    if isinstance(sigma, (int, float)):
        sigma = [float(sigma)] * dim
    taps = []
    for size, std in zip(kernel_size, sigma):
        mean = (size - 1) / 2.0
        coords = jnp.arange(size, dtype=jnp.float32)
        g = (1.0 / (std * math.sqrt(2.0 * math.pi))) * jnp.exp(
            -(((coords - mean) / (2.0 * std)) ** 2)
        )
        taps.append(g / jnp.sum(g))
    return taps


def make_gaussian_kernel(channels, kernel_size, sigma, dim=2):
    """The full [C, kH, kW] kernel exactly as the PyTorch module builds it
    (used only by the plain-JAX reference conv)."""
    if isinstance(kernel_size, (int, float)):
        kernel_size = [int(kernel_size)] * dim
    if isinstance(sigma, (int, float)):
        sigma = [float(sigma)] * dim

    kernel = jnp.ones((), dtype=jnp.float32)
    meshgrids = jnp.meshgrid(
        *[jnp.arange(size, dtype=jnp.float32) for size in kernel_size],
        indexing="ij",
    )
    for size, std, mgrid in zip(kernel_size, sigma, meshgrids):
        mean = (size - 1) / 2.0
        kernel = kernel * (
            1.0 / (std * math.sqrt(2.0 * math.pi))
            * jnp.exp(-(((mgrid - mean) / (2.0 * std)) ** 2))
        )
    kernel = kernel / jnp.sum(kernel)
    kernel = jnp.broadcast_to(kernel[None, ...], (channels,) + kernel.shape)
    return kernel


# ---------------------------------------------------------------------------
# Pallas kernel: one (batch, channel-block) slab per grid step.
#   vertical pass  : kH scalar*vector taps (SMEM taps, VPU, f32 accumulate)
#   horizontal pass: banded matmul on the MXU (no lane-axis slices/shifts)
# ---------------------------------------------------------------------------
def _gaussian_smooth_kernel(wh_ref, bw_ref, x_ref, o_ref):
    # wh_ref: SMEM (kH,) f32   — vertical taps (scalar reads)
    # bw_ref: VMEM (W, Wo) f32 — banded horizontal taps (resident: same block
    #                            index every grid step -> DMA'd once)
    # x_ref : VMEM (1, c_blk, H, W)
    # o_ref : VMEM (1, c_blk, Ho, Wo)
    _, c_blk, Ho, Wo = o_ref.shape
    kH = wh_ref.shape[0]

    bw = bw_ref[...]                                     # (W, Wo) f32

    for c in range(c_blk):                               # static unroll (c_blk small)
        # Single upcast to f32; accumulate in f32.
        xc = x_ref[0, c, :, :].astype(jnp.float32)       # (H, W)

        # Vertical (sublane-axis) pass first: only Ho rows feed the lane pass.
        tmp = wh_ref[0] * xc[0:Ho, :]
        for kh in range(1, kH):                          # kH tiny -> unrolled
            tmp = tmp + wh_ref[kh] * xc[kh:kh + Ho, :]

        # Horizontal (lane-axis) pass on the MXU: shift-and-sum via banded
        # matmul -> zero lane shifts, zero shifted VMEM copies.
        acc = jnp.dot(tmp, bw, preferred_element_type=jnp.float32)   # (Ho, Wo)
        o_ref[0, c, :, :] = acc.astype(o_ref.dtype)


def _pick_c_blk(B, C, H, W, Ho, Wo, itemsize):
    """Pick the channel-block size: largest divisor of C that keeps the
    per-step VMEM working set under a v5e/v6e/v7x-safe budget, keeps the
    unrolled per-step channel loop short, and (when possible) leaves >= 4
    grid steps so both v7x TensorCores get work and the automatic
    double-buffering has iterations to overlap."""
    f32 = 4

    def footprint(cb):
        in_blk = cb * H * W * itemsize
        out_blk = cb * Ho * Wo * itemsize
        temps = cb * (H * W + Ho * W + Ho * Wo) * f32   # xc upcast, tmp, matmul out
        return 2 * in_blk + 2 * out_blk + temps          # 2x = double buffering

    budget = 12 * 1024 * 1024      # conservative: v5e default scoped VMEM is 16 MiB
    max_unroll = 8                 # bound the unrolled per-step channel loop
    divisors = [d for d in range(1, C + 1) if C % d == 0]
    fitting = [d for d in divisors if d <= max_unroll and footprint(d) <= budget] or [1]
    parallel = [d for d in fitting if B * (C // d) >= 4]
    c_blk = max(parallel) if parallel else max(fitting)
    return c_blk, footprint(c_blk)


def gaussian_smoothing(x, taps_h, taps_w):
    """x: [B, C, H, W]; taps_h: [kH]; taps_w: [kW] (normalized 1D Gaussians).
    Returns [B, C, H-kH+1, W-kW+1] — depthwise VALID Gaussian blur."""
    B, C, H, W = x.shape
    kH = int(taps_h.shape[0])
    kW = int(taps_w.shape[0])
    assert H >= kH and W >= kW, "input smaller than the Gaussian kernel"
    Ho, Wo = H - kH + 1, W - kW + 1

    # Match `self.weight.to(input.dtype)` rounding, then compute in f32.
    taps_h = taps_h.astype(x.dtype).astype(jnp.float32)
    taps_w = taps_w.astype(x.dtype).astype(jnp.float32)

    # Banded matrix for the horizontal (MXU) pass:
    #   BW[w, j] = ww[w - j]  for 0 <= w - j < kW
    # so (row @ BW)[j] = sum_kw ww[kw] * row[j + kw]  (valid cross-correlation,
    # exactly what F.conv2d computes; the Gaussian is symmetric anyway).
    d = jnp.arange(W)[:, None] - jnp.arange(Wo)[None, :]
    bw = jnp.where((d >= 0) & (d < kW), taps_w[jnp.clip(d, 0, kW - 1)], 0.0)
    bw = bw.astype(jnp.float32)

    itemsize = jnp.dtype(x.dtype).itemsize
    c_blk, blk_bytes = _pick_c_blk(B, C, H, W, Ho, Wo, itemsize)
    grid = (B, C // c_blk)

    vmem_limit = int(min(100 * 2**20, max(32 * 2**20, 2 * blk_bytes + bw.size * 4)))

    return pl.pallas_call(
        _gaussian_smooth_kernel,
        out_shape=jax.ShapeDtypeStruct((B, C, Ho, Wo), x.dtype),
        grid_spec=pltpu.PrefetchScalarGridSpec(
            num_scalar_prefetch=0,
            grid=grid,
            in_specs=[
                pl.BlockSpec(memory_space=pltpu.MemorySpace.SMEM),          # taps_h
                pl.BlockSpec((W, Wo), lambda b, c: (0, 0)),                 # banded BW
                pl.BlockSpec((1, c_blk, H, W), lambda b, c: (b, c, 0, 0)),  # input
            ],
            out_specs=pl.BlockSpec((1, c_blk, Ho, Wo), lambda b, c: (b, c, 0, 0)),
        ),
        compiler_params=pltpu.CompilerParams(
            dimension_semantics=("parallel", "parallel"),
            vmem_limit_bytes=vmem_limit,
        ),
    )(taps_h, bw, x)


# ---------------------------------------------------------------------------
# Reference (plain JAX, high-precision) for the correctness check
# ---------------------------------------------------------------------------
def gaussian_smoothing_ref(x, weight):
    C = x.shape[1]
    w = weight[:, None, :, :].astype(x.dtype)  # [C, 1, kH, kW]
    return jax.lax.conv_general_dilated(
        x, w,
        window_strides=(1, 1),
        padding="VALID",
        dimension_numbers=("NCHW", "OIHW", "NCHW"),
        feature_group_count=C,
        precision=jax.lax.Precision.HIGHEST,
    )


if __name__ == "__main__":
    B, C, H, W = 2, 4, 16, 16
    kernel_size, sigma = 3, 0.5

    key = jax.random.PRNGKey(0)
    x = jax.random.normal(key, (B, C, H, W), dtype=jnp.float32)

    taps_h, taps_w = make_gaussian_taps(kernel_size, sigma, dim=2)
    weight2d = make_gaussian_kernel(C, kernel_size, sigma, dim=2)

    out = gaussian_smoothing(x, taps_h, taps_w)
    out = jax.block_until_ready(out)

    ref = gaussian_smoothing_ref(x, weight2d)
    assert out.shape == (B, C, H - kernel_size + 1, W - kernel_size + 1)
    # Tolerance covers the MXU's f32-contraction precision modes across TPU
    # generations; the separable math itself is exact, and real bugs (wrong
    # taps / band offsets / shifted output) produce errors O(0.1 - 1).
    assert jnp.allclose(out, ref, atol=2e-2, rtol=1e-2), "mismatch vs reference conv"

    print("KERNEL_OK")
</pallas_src>

<mosaic_0001>
module attributes {stable_mosaic.version = 11 : i64} {
  func.func @_gaussian_smooth_kernel(%arg0: i32, %arg1: i32, %arg2: memref<3xf32, #tpu.memory_space<smem>>, %arg3: memref<16x14xf32, #tpu.memory_space<vmem>>, %arg4: memref<1x2x16x16xf32, #tpu.memory_space<vmem>>, %arg5: memref<1x2x14x14xf32, #tpu.memory_space<vmem>>) attributes {dimension_semantics = [#tpu.dimension_semantics<parallel>, #tpu.dimension_semantics<parallel>], iteration_bounds = array<i64: 2, 2>, scalar_prefetch = 0 : i64, scratch_operands = 0 : i64, tpu.core_type = #tpu.core_type<tc>, window_params = [{transform_indices = @transform_0, window_bounds = array<i64: 3>}, {pipeline_mode = #tpu.pipeline_mode<synchronous>, transform_indices = @transform_1, window_bounds = array<i64: 16, 14>}, {transform_indices = @transform_2, window_bounds = array<i64: 1, 2, 16, 16>}, {transform_indices = @transform_3, window_bounds = array<i64: 1, 2, 14, 14>}]} {
    %c0 = arith.constant 0 : index
    %c0_0 = arith.constant 0 : index
    %0 = vector.load %arg3[%c0, %c0_0] : memref<16x14xf32, #tpu.memory_space<vmem>>, vector<16x14xf32>
    %c0_1 = arith.constant 0 : index
    %c0_2 = arith.constant 0 : index
    %c0_3 = arith.constant 0 : index
    %c0_4 = arith.constant 0 : index
    %1 = vector.load %arg4[%c0_1, %c0_2, %c0_3, %c0_4] : memref<1x2x16x16xf32, #tpu.memory_space<vmem>>, vector<1x1x16x16xf32>
    %2 = vector.shape_cast %1 : vector<1x1x16x16xf32> to vector<16x16xf32>
    %c0_5 = arith.constant 0 : index
    %3 = memref.load %arg2[%c0_5] : memref<3xf32, #tpu.memory_space<smem>>
    %4 = vector.extract_strided_slice %2 {offsets = [0, 0], sizes = [14, 16], strides = [1, 1]} : vector<16x16xf32> to vector<14x16xf32>
    %5 = vector.broadcast %3 : f32 to vector<14x16xf32>
    %6 = arith.mulf %5, %4 : vector<14x16xf32>
    %c1 = arith.constant 1 : index
    %7 = memref.load %arg2[%c1] : memref<3xf32, #tpu.memory_space<smem>>
    %8 = vector.extract_strided_slice %2 {offsets = [1, 0], sizes = [14, 16], strides = [1, 1]} : vector<16x16xf32> to vector<14x16xf32>
    %9 = vector.broadcast %7 : f32 to vector<14x16xf32>
    %10 = arith.mulf %9, %8 : vector<14x16xf32>
    %11 = arith.addf %6, %10 : vector<14x16xf32>
    %c2 = arith.constant 2 : index
    %12 = memref.load %arg2[%c2] : memref<3xf32, #tpu.memory_space<smem>>
    %13 = vector.extract_strided_slice %2 {offsets = [2, 0], sizes = [14, 16], strides = [1, 1]} : vector<16x16xf32> to vector<14x16xf32>
    %14 = vector.broadcast %12 : f32 to vector<14x16xf32>
    %15 = arith.mulf %14, %13 : vector<14x16xf32>
    %16 = arith.addf %11, %15 : vector<14x16xf32>
    %cst = arith.constant dense<0.000000e+00> : vector<14x14xf32>
    %17 = tpu.matmul %16, %0, %cst {dimension_numbers = #tpu.dot_dimension_numbers<[1], [0], [0], [1], [0, 0, 1, 1], [], []>} : vector<14x16xf32>, vector<16x14xf32>, vector<14x14xf32> -> vector<14x14xf32>
    %c0_6 = arith.constant 0 : index
    %c0_7 = arith.constant 0 : index
    %c0_8 = arith.constant 0 : index
    %c0_9 = arith.constant 0 : index
    %18 = vector.load %arg5[%c0_6, %c0_7, %c0_8, %c0_9] : memref<1x2x14x14xf32, #tpu.memory_space<vmem>>, vector<1x1x14x14xf32>
    %19 = vector.shape_cast %18 : vector<1x1x14x14xf32> to vector<14x14xf32>
    %20 = vector.shape_cast %17 : vector<14x14xf32> to vector<1x1x14x14xf32>
    tpu.vector_store %arg5[%c0_6, %c0_7, %c0_8, %c0_9], %20 {strides = array<i32>} : memref<1x2x14x14xf32, #tpu.memory_space<vmem>>, vector<1x1x14x14xf32>,
    %c0_10 = arith.constant 0 : index
    %c1_11 = arith.constant 1 : index
    %c0_12 = arith.constant 0 : index
    %c0_13 = arith.constant 0 : index
    %21 = vector.load %arg4[%c0_10, %c1_11, %c0_12, %c0_13] : memref<1x2x16x16xf32, #tpu.memory_space<vmem>>, vector<1x1x16x16xf32>
    %22 = vector.shape_cast %21 : vector<1x1x16x16xf32> to vector<16x16xf32>
    %c0_14 = arith.constant 0 : index
    %23 = memref.load %arg2[%c0_14] : memref<3xf32, #tpu.memory_space<smem>>
    %24 = vector.extract_strided_slice %22 {offsets = [0, 0], sizes = [14, 16], strides = [1, 1]} : vector<16x16xf32> to vector<14x16xf32>
    %25 = vector.broadcast %23 : f32 to vector<14x16xf32>
    %26 = arith.mulf %25, %24 : vector<14x16xf32>
    %c1_15 = arith.constant 1 : index
    %27 = memref.load %arg2[%c1_15] : memref<3xf32, #tpu.memory_space<smem>>
    %28 = vector.extract_strided_slice %22 {offsets = [1, 0], sizes = [14, 16], strides = [1, 1]} : vector<16x16xf32> to vector<14x16xf32>
    %29 = vector.broadcast %27 : f32 to vector<14x16xf32>
    %30 = arith.mulf %29, %28 : vector<14x16xf32>
    %31 = arith.addf %26, %30 : vector<14x16xf32>
    %c2_16 = arith.constant 2 : index
    %32 = memref.load %arg2[%c2_16] : memref<3xf32, #tpu.memory_space<smem>>
    %33 = vector.extract_strided_slice %22 {offsets = [2, 0], sizes = [14, 16], strides = [1, 1]} : vector<16x16xf32> to vector<14x16xf32>
    %34 = vector.broadcast %32 : f32 to vector<14x16xf32>
    %35 = arith.mulf %34, %33 : vector<14x16xf32>
    %36 = arith.addf %31, %35 : vector<14x16xf32>
    %cst_17 = arith.constant dense<0.000000e+00> : vector<14x14xf32>
    %37 = tpu.matmul %36, %0, %cst_17 {dimension_numbers = #tpu.dot_dimension_numbers<[1], [0], [0], [1], [0, 0, 1, 1], [], []>} : vector<14x16xf32>, vector<16x14xf32>, vector<14x14xf32> -> vector<14x14xf32>
    %c0_18 = arith.constant 0 : index
    %c1_19 = arith.constant 1 : index
    %c0_20 = arith.constant 0 : index
    %c0_21 = arith.constant 0 : index
    %38 = vector.load %arg5[%c0_18, %c1_19, %c0_20, %c0_21] : memref<1x2x14x14xf32, #tpu.memory_space<vmem>>, vector<1x1x14x14xf32>
    %39 = vector.shape_cast %38 : vector<1x1x14x14xf32> to vector<14x14xf32>
    %40 = vector.shape_cast %37 : vector<14x14xf32> to vector<1x1x14x14xf32>
    tpu.vector_store %arg5[%c0_18, %c1_19, %c0_20, %c0_21], %40 {strides = array<i32>} : memref<1x2x14x14xf32, #tpu.memory_space<vmem>>, vector<1x1x14x14xf32>,
    return
  }
  func.func @transform_0(%arg0: i32, %arg1: i32) -> i32 {
    %c0_i32 = arith.constant 0 : i32
    %c0_i32_0 = arith.constant 0 : i32
    return %c0_i32 : i32
  }
  func.func @transform_1(%arg0: i32, %arg1: i32) -> (i32, i32) {
    %c0_i32 = arith.constant 0 : i32
    %c0_i32_0 = arith.constant 0 : i32
    %c0_i32_1 = arith.constant 0 : i32
    return %c0_i32, %c0_i32_0 : i32, i32
  }
  func.func @transform_2(%arg0: i32, %arg1: i32) -> (i32, i32, i32, i32) {
    %c0_i32 = arith.constant 0 : i32
    %c0_i32_0 = arith.constant 0 : i32
    %c0_i32_1 = arith.constant 0 : i32
    return %arg0, %arg1, %c0_i32, %c0_i32_0 : i32, i32, i32, i32
  }
  func.func @transform_3(%arg0: i32, %arg1: i32) -> (i32, i32, i32, i32) {
    %c0_i32 = arith.constant 0 : i32
    %c0_i32_0 = arith.constant 0 : i32
    %c0_i32_1 = arith.constant 0 : i32
    return %arg0, %arg1, %c0_i32, %c0_i32_0 : i32, i32, i32, i32
  }
}

</mosaic_0001>

<bundles_post_ra>
// kernel: tpu_custom_call.1
= control target key start
LH: loop header
LB: loop body
LE: loop exit
PB: predicated region body
PF: predicated region fallthrough
CT: control target
= control target key end

     0   :  { %s1099_s0 = inlined_call_operand.hbm [shape: f32[3], index: 0, kind: input, shape index: {}]   ;;  %s1100_s1 = inlined_call_operand.hbm [shape: f32[16,14], index: 1, kind: input, shape index: {}]   ;;  %s1101_s2 = inlined_call_operand.hbm [shape: f32[2,4,16,16], index: 2, kind: input, shape index: {}]   ;;  %s1102_s3 = inlined_call_operand.vmem [shape: f32[2,4,14,14], index: 3, kind: output, shape index: {}]  }
   0x1   :  { %1106 = sst [smem:[#allocation12_spill]] %s1099_s0 }
   0x2   :  { %1107 = sst [smem:[#allocation13_spill]] %s1100_s1 }
   0x3   :  { %8 = vsyncpa [#allocation4], 0 }
   0x4   :  { %9 = vsyncpa [#allocation3], 0 }
   0x5   :  { %10 = vsyncpa [#allocation7], 0 }
   0x6   :  { %12 = vsyncpa [#allocation7 + $0x1], 0  ;;  %s932_s12 = smov 0   ;;  %s934_s13 = smov 0  }
   0x7   :  { %s936_s14 = smov 0   ;;  %s938_s15 = smov 0  }
   0x8   :  { %s940_s16 = smov 0   ;;  %s942_s17 = smov 0  }
   0x9   :  { %s944_s18 = smov 0   ;;  %s946_s19 = smov 0  }
   0xa LB: > { %s616_s20 = sadd.s32 4294967295, %s905_s19   ;;  %p88_p0 = scmp.ne.s32.totalorder %s885_s14, %s881_s13  ;;  %s905_s19 = sphi %s946_s19, %s18_s19   ;;  %s901_s18 = sphi %s944_s18, %s1126_s18   ;;  %s897_s17 = sphi %s942_s17, %s1125_s17   ;;  %s893_s16 = sphi %s940_s16, %s1124_s16   ;;  %s889_s15 = sphi %s938_s15, %s1123_s15   ;;  %s885_s14 = sphi %s936_s14, %s1122_s14   ;;  %s881_s13 = sphi %s934_s13, %s1121_s13   ;;  %s877_s12 = sphi %s932_s12, %s1120_s12  }
   0xb   : > { %p89_p1 = scmp.eq.s32.totalorder %s905_s19, 0  ;;  %p94_p2 = scmp.ne.s32.totalorder %s881_s13, %s877_s12 }
   0xc   : > { %p976_p3 = scmp.eq.s32.totalorder %s616_s20, 0  ;;  %p618_p5 = scmp.ge.s32.totalorder %s905_s19, 1 }
   0xd   : > { %p90_p4 = por %p89_p1, %p88_p0  ;;  %p133_p7 = scmp.lt.s32.totalorder %s905_s19, 5 }
   0xe   : > { %p983_p6 = por %p976_p3, %p94_p2  ;;  %p695_p9 = scmp.lt.s32.totalorder %s905_s19, 4 }
   0xf   : > { %p988_p8 = pnand %p618_p5, %p133_p7  ;;  %s907_s25 = smov [#allocation5]  }
  0x10   : > { %s154_s26 = sshll.u32 %s907_s25, 4  ;;  %p995_p11 = pnand %p695_p9, %p90_p4  ;;  %s155_s26 = int_to_ptr.vmem [resolvable:$true] %s154_s26 }
  0x11   : > { %p682_p10 = pneg %p988_p8  ;;  %s908_s29 = smov [#allocation2]  }
  0x12   : > { %s1113_s0 = sld [smem:[#allocation12_spill]]  ;;  %s788_s5 = scalar_lea.vmem %s155_s26, 256 }
  0x13   : > { %p1001_p12 = pnand %p682_p10, %p976_p3  ;;  %p789_p0 = scmp.ne.s32.totalorder %s155_s26, %s788_s5 }
  0x14   : > { %p796_p4 = scmp.lt.s32.totalorder %s155_s26, %s155_s26  ;;  %p797_p5 = scmp.lt.s32.totalorder %s788_s5, %s788_s5 }
  0x15   : > { %p779_p13 = pneg %p1001_p12 }
  0x16   : > { %p798_p7 = por %p797_p5, %p796_p4 }
  0x17   : > { %p791_p1 = pnand %p789_p0, %p779_p13 }
  0x18   : > { %685 = dma.hbm_to_smem (!%p1001_p12), %s1113_s0, 16, %s908_s29, [#allocation4]  }
  0x19   : > { %p792_p2 = pneg %p791_p1 }
  0x1b   : > { %p799_p9 = pnand %p798_p7, %p792_p2 }
  0x1d   : > { %802 = shalt.err (!%p799_p9)
}
  0x1e   : > { %s1103_s6 = smov 128   ;;  %s1104_s7 = smov 8  }
  0x1f   : > { %s1114_s1 = sld [smem:[#allocation13_spill]]  ;;  %s27_s10 = sadd.s32 1, %s897_s17 }
  0x20   : > { %p28_p10 = scmp.ge.s32.totalorder %s27_s10, 2  ;;  %s30_s11 = sadd.s32 1, %s901_s18 }
  0x21   : > { %s168_s12 = sand.u32 1, %s885_s14   ;;  %s649_s20 = sshll.u32 %s897_s17, 2 }
  0x22   : > { %s1128_s10 = smov (%p28_p10, %s27_s10), 0  ;;  %s1130_s11 = smov (!%p28_p10, %s30_s11), %s901_s18 }
  0x23   : > { %1115 = sst [smem:[#allocation11_spill]] %s1128_s10  ;;  %s77_s25 = ssub.s32 %s897_s17, %s1128_s10 }
  0x24   : > { %p32_p13 = scmp.ge.s32.totalorder %s1130_s11, 2  ;;  %s622_s28 = sshll.u32 %s168_s12, 5 }
  0x25   : > { %688 = dma.hbm_to_vmem [thread:$0]  (!%p1001_p12), %s1114_s1, 256, %s155_s26, [#allocation3], %s1103_s6, %s1103_s6, %s1104_s7  }
  0x26   : > { %s625_s29 = sshll.u32 %s901_s18, 3  ;;  %s1132_s11 = smov (%p32_p13, %s1130_s11), 0 }
  0x27   : > { %s179_s30 = sadd.s32 %s649_s20, %s625_s29  ;;  %s172_s26 = scalar_lea.vmem [#allocation6], %s622_s28 }
  0x28   : > { %s182_s4 = sshll.u32 %s172_s26, 4  ;;  %s76_s5 = ssub.s32 %s901_s18, %s1132_s11  ;;  %s183_s4 = int_to_ptr.vmem [resolvable:$true] %s182_s4 }
  0x29   : > { %s626_s8 = sshll.u32 %s179_s30, 7  ;;  %s78_s9 = sor.u32 %s77_s25, %s76_s5 }
  0x2a   : > { %s181_s7 = scalar_lea.hbm %s1101_s2, %s626_s8  ;;  %p79_p12 = scmp.eq.s32.totalorder %s78_s9, 0 }
  0x2b   : > { %s169_s0 = scalar_lea.sflag [#allocation7], %s168_s12  ;;  %p805_p0 = pneg %p995_p11 }
  0x2c   : > { %s816_s1 = scalar_lea.vmem %s183_s4, 512  ;;  %s911_s10 = smov [#allocation6]  }
  0x2d   : > { %p817_p1 = scmp.ne.s32.totalorder %s183_s4, %s816_s1  ;;  %s821_s20 = sshll.u32 %s911_s10, 4  ;;  %s822_s20 = int_to_ptr.vmem [resolvable:$false] %s821_s20 }
  0x2e   : > { %s823_s28 = scalar_lea.vmem %s822_s20, 1024  ;;  %p824_p5 = scmp.lt.s32.totalorder %s183_s4, %s822_s20 }
  0x2f   : > { %p819_p2 = pnand %p817_p1, %p805_p0  ;;  %p825_p7 = scmp.lt.s32.totalorder %s823_s28, %s816_s1 }
  0x31   : > { %p820_p4 = pneg %p819_p2  ;;  %p826_p9 = por %p825_p7, %p824_p5 }
  0x33   : > { %p827_p10 = pnand %p826_p9, %p820_p4 }
  0x35   : > { %830 = shalt.err (!%p827_p10)
}
  0x36   : > { %s1116_s21 = smov 8   ;;  %s1117_s6 = smov 128  }
  0x37   : > { %692 = dma.hbm_to_vmem [thread:$0]  (!%p995_p11), %s181_s7, 512, %s183_s4, %s169_s0, %s1117_s6, %s1117_s6, %s1116_s21  }
  0x38   : > { %s1118_s12 = sadd.s32 1, %s885_s14  ;;  %194 = sbr.rel (%p988_p8) target bundleno = 285 (0x11d), region = 32 }
  0x39   : > { %s1048_s25 = scalar_select %p79_p12, %s885_s14, %s1118_s12  }
  0x3d   : > { %864 = dma.done.wait (%p976_p3), [#allocation4], 16  }
  0x3e   : > { %866 = vsyncadd (%p976_p3), [#allocation4], 4294967280 }
  0x3f   : > { %868 = dma.done.wait (%p976_p3), [#allocation3], 256  }
  0x40   : > { %870 = vsyncadd (%p976_p3), [#allocation3], 4294967040  ;;  %s204_s0 = sand.u32 1, %s881_s13  }
  0x41   : > { %s630_s1 = sshll.u32 %s204_s0, 5  ;;  %s205_s27 = scalar_lea.sflag [#allocation7], %s204_s0 }
  0x42   : > { %s208_s7 = scalar_lea.vmem [#allocation6], %s630_s1 }
  0x43   : > { %872 = dma.done.wait (%p983_p6), %s205_s27, 512  }
  0x44   : > { %874 = vsyncadd (%p983_p6), %s205_s27, 4294966784 }
  0x45   : > { %213 = sfence }
  0x46   : > { %v250_v0 = vld [vmem:[#allocation5 + $0x8] sm:$0xff]  ;;  %v249_v1 = vld [vmem:[#allocation5] sm:$0xff]  ;;  %s253_s24 = sld [smem:[#allocation2]]  ;;  %v251_v2 = vld [vmem:[%s208_s7] sm:$0xff]  ;;  %vm263_vm0 = vcmask 1046528   ;;  %vm277_vm1 = vcmask 1045504  }
  0x47   : > { %658 = vmatprep.subr.mxu0 %v250_v0  ;;  %665 = vmatprep.subr.mxu1 %v250_v0  ;;  %s635_s10 = sld [smem:[#allocation2 + $0x1]]  ;;  %v252_v3 = vld [vmem:[%s208_s7 + $0x8] sm:$0xff]  ;;  %v639_v5 = vld [vmem:[%s208_s7 + $0x10] sm:$0xff]  ;;  %v640_v6 = vld [vmem:[%s208_s7 + $0x18] sm:$0xff]  ;;  %vm285_vm2 = vcmask 130048   ;;  %s631_s23 = sshll.u32 %s889_s15, 1 }
  0x48   : > { %659 = vmatpush3.msra.mxu0 %v250_v0  ;;  %666 = vmatpush3.msra.mxu1 %v250_v0  ;;  %s636_s22 = sld [smem:[#allocation2 + $0x2]]  ;;  %p239_p3 = scmp.lt.s32.totalorder %s893_s16, 1  ;;  %vm369_vm3 = vcmask 111616   ;;  %vm367_vm4 = vcmask 113664  }
  0x49   : > { %660 = vmatprep.subr.mxu0 %v249_v1  ;;  %667 = vmatprep.subr.mxu1 %v249_v1  ;;  %p241_p6 = scmp.lt.s32.totalorder %s631_s23, 3 }
  0x4a   : > { %661 = vmatpush3.msra.mxu0 %v249_v1  ;;  %668 = vmatpush3.msra.mxu1 %v249_v1  ;;  %s1134_s16 = smov (!%p239_p3, %s893_s16), 1 }
  0x4b   : > { %s1136_s23 = smov (!%p241_p6, %s631_s23), 3  ;;  %s633_s30 = sshll.u32 %s1134_s16, 3 }
  0x4c   : > { %v254_v4 = vstv %s253_s24  ;;  %s632_s29 = sshll.u32 %s1136_s23, 1 }
  0x4d   : > { %v255_v7 = vmul.f32 %v254_v4, %v251_v2  ;;  %v256_v8 = vmul.f32 %v254_v4, %v252_v3  ;;  %v258_v9 = vstv %s635_s10  ;;  %v376_v10 = vmul.f32 %v639_v5, %v254_v4  ;;  %s245_s26 = sadd.s32 %s633_s30, %s632_s29 }
  0x4e   : > { %v259_v11 = vmul.f32 %v258_v9, %v251_v2  ;;  %v260_v12 = vmul.f32 %v258_v9, %v252_v3  ;;  %v272_v13 = vstv %s636_s22  ;;  %v377_v14 = vmul.f32 %v640_v6, %v254_v4  ;;  %s634_s4 = sshll.u32 %s245_s26, 3 }
  0x4f   : > { %v273_v15 = vmul.f32 %v272_v13, %v251_v2  ;;  %v274_v16 = vmul.f32 %v272_v13, %v252_v3  ;;  %v380_v17 = vmul.f32 %v639_v5, %v258_v9  ;;  %v381_v18 = vmul.f32 %v640_v6, %v258_v9  ;;  %s247_s9 = scalar_lea.vmem %s1102_s3, %s634_s4 }
  0x50   : > { %v264_v19 = vrot.slane %v259_v11, 1  ;;  %v265_v20 = vrot.slane %v260_v12, 1  ;;  %v393_v21 = vmul.f32 %v639_v5, %v272_v13  ;;  %v394_v22 = vmul.f32 %v640_v6, %v272_v13 }
  0x51   : > { %v278_v23 = vrot.slane %v273_v15, 2  ;;  %v279_v24 = vrot.slane %v274_v16, 2  ;;  %v384_v25 = vrot.slane %v380_v17, 1  ;;  %v385_v26 = vrot.slane %v381_v18, 1 }
  0x52   : > { %v266_v27 = vsel %vm263_vm0, %v264_v19, %v265_v20  ;;  %v397_v28 = vrot.slane %v393_v21, 2  ;;  %v398_v29 = vrot.slane %v394_v22, 2  ;;  %v270_v30 = vadd.f32 %v265_v20, %v256_v8 }
  0x53   : > { %v269_v31 = vadd.f32 %v266_v27, %v255_v7  ;;  %v280_v32 = vsel %vm277_vm1, %v278_v23, %v279_v24  ;;  %v386_v33 = vsel %vm263_vm0, %v384_v25, %v385_v26  ;;  %v390_v34 = vadd.f32 %v385_v26, %v377_v14 }
  0x54   : > { %v389_v35 = vadd.f32 %v386_v33, %v376_v10  ;;  %v399_v36 = vsel %vm277_vm1, %v397_v28, %v398_v29  ;;  %v284_v37 = vadd.f32 %v279_v24, %v270_v30 }
  0x55   : > { %v283_v38 = vadd.f32 %v280_v32, %v269_v31  ;;  %v403_v39 = vadd.f32 %v398_v29, %v390_v34 }
  0x56   : > { %v402_v40 = vadd.f32 %v399_v36, %v389_v35 }
  0x57   : > { %662 = vmatprep.mubr.msk.f32.mxu0 %vm285_vm2, %v283_v38 }
  0x58   : > { %669 = vmatprep.mubr.msk.f32.mxu1 %vm285_vm2, %v402_v40  ;;  %663 = vmatmul.mubr.msk.f32.vlgmr.msra.gmra.mxu0 %vm285_vm2, %v284_v37 }
  0x59   : > { %670 = vmatmul.mubr.msk.f32.vlgmr.msra.gmra.mxu1 %vm285_vm2, %v403_v39 }
 0x118   : > { %v664_v41 = vpop.f32.mrf.mxu0 }
 0x119   : > { %370 = vst.msk [vmem:[%s247_s9 + $0x8] sm:$0x3f] %vm369_vm3, %v664_v41  ;;  %v671_v42 = vpop.f32.mrf.mxu1 }
 0x11a   : > { %646 = vst.msk [vmem:[%s247_s9 + $0x18] sm:$0x3f] %vm369_vm3, %v671_v42  ;;  %v358_v43 = vpop.f32.mrf.mxu0 }
 0x11b   : > { %368 = vst.msk [vmem:[%s247_s9] sm:$0xff] %vm367_vm4, %v358_v43  ;;  %v476_v44 = vpop.f32.mrf.mxu1 }
 0x11c   : > { %645 = vst.msk [vmem:[%s247_s9 + $0x10] sm:$0xff] %vm367_vm4, %v476_v44 }
 0x11d PF: > { %s18_s19 = sadd.s32 1, %s905_s19   ;;  %s1119_s20 = sld [smem:[#allocation11_spill]] }
 0x11e   : > { %p15_p8 = scmp.ge.s32.totalorder %s18_s19, 6   ;;  %s1120_s12 = smov %s881_s13 }
 0x11f   : > { %s1121_s13 = smov %s885_s14  ;;  %s1122_s14 = smov %s1048_s25 }
 0x120   : > { %s1123_s15 = smov %s897_s17  ;;  %s1124_s16 = smov %s901_s18 }
 0x121   : > { %s1126_s18 = smov %s1132_s11  ;;  %17 = sbr.rel (!%p15_p8) target bundleno = 10 (0xa), region = 84 }
 0x123   : > { %s1125_s17 = smov %s1119_s20 }
 0x126   :  { %520 = vsyncpa [#allocation3], 1 }
 0x127   :  { %522 = vsyncpa [#allocation3 + $0x1], 1 }
 0x128   :  { %523 = vsyncpa [#allocation7], 1 }
 0x129   :  { %525 = vsyncpa [#allocation7 + $0x1], 1 }
 0x12a   :  { %526 = vsyncpa [#allocation4], 1 }
 0x12b   :  { %528 = vsyncpa [#allocation4 + $0x1], 1 }

</bundles_post_ra>
